<compile_context>
chip_gen: v6e
topology: v6e:2x2x1
jax: 0.10.0
libtpu: 0.0.40
codegen_flags: <defaults>
</compile_context>

<pallas_src>
import functools

import jax
import jax.numpy as jnp
from jax.experimental import pallas as pl
from jax.experimental.pallas import tpu as pltpu


def _round_up(x, m):
    return (x + m - 1) // m * m


def _classifier_head_kernel(pooled_ref, w_ref, b_ref, labels_ref,
                            logits_ref, loss_ref,
                            *, n_rows, n_cols, inv_count):
    """One batch tile of the classifier head.

    pooled_ref: (TB, H)    w_ref: (H, Lp)    b_ref: (1, Lp)
    labels_ref: (TB, Lp)   logits_ref: (TB, Lp)   loss_ref: (1, 1) in SMEM
    """
    i = pl.program_id(0)

    @pl.when(i == 0)
    def _init():
        loss_ref[0, 0] = jnp.float32(0.0)

    # Linear classifier on the CLS embedding: logits = pooled @ W^T + b.
    z = jnp.dot(pooled_ref[...], w_ref[...],
                preferred_element_type=jnp.float32)
    z = z + b_ref[...].astype(jnp.float32)
    logits_ref[...] = z.astype(logits_ref.dtype)

    # BCEWithLogitsLoss (numerically stable elementwise form):
    #   max(z, 0) - z*y + log(1 + exp(-|z|))
    y = labels_ref[...].astype(jnp.float32)
    loss_elem = jnp.maximum(z, 0.0) - z * y + jnp.log1p(jnp.exp(-jnp.abs(z)))

    # Mask out batch-padding rows and label-padding lanes, then accumulate.
    tb, lp = loss_elem.shape
    row_ids = i * tb + jax.lax.broadcasted_iota(jnp.int32, (tb, lp), 0)
    col_ids = jax.lax.broadcasted_iota(jnp.int32, (tb, lp), 1)
    valid = (row_ids < n_rows) & (col_ids < n_cols)
    loss_ref[0, 0] += jnp.sum(jnp.where(valid, loss_elem, 0.0))

    @pl.when(i == pl.num_programs(0) - 1)
    def _finalize():
        loss_ref[0, 0] = loss_ref[0, 0] * inv_count   # mean over B*L elements


def instructblip_classifier_forward(last_hidden_state, weight, bias, labels,
                                    *, batch_tile=128):
    """Pallas implementation of InstructBLIPClassifier.forward (head only).

    Args:
      last_hidden_state: [B, S, H]  output of the vision_language_encoder
      weight:            [L, H]     nn.Linear weight (PyTorch layout)
      bias:              [L]        nn.Linear bias
      labels:            [B, L]     multi-label targets
    Returns:
      dict with 'loss' (scalar f32) and 'logits' (f32[B, L]).
    """
    B, S, H = last_hidden_state.shape
    L = weight.shape[0]

    # CLS pooling OUTSIDE the kernel: only sequence position 0 is used, so the
    # kernel never touches the other S-1 rows (S x less HBM->VMEM traffic).
    pooled = last_hidden_state[:, 0, :]                       # (B, H)

    Lp = _round_up(max(L, 1), 128)          # lane-dense logits / labels
    TB = min(batch_tile, _round_up(B, 8))   # sublane-aligned batch tile
    Bp = _round_up(B, TB)
    nb = Bp // TB

    pooled_p = jnp.zeros((Bp, H), pooled.dtype).at[:B].set(pooled)
    w_p = jnp.zeros((H, Lp), weight.dtype).at[:, :L].set(weight.T)
    b_p = jnp.zeros((1, Lp), bias.dtype).at[0, :L].set(bias)
    labels_p = jnp.zeros((Bp, Lp), jnp.float32).at[:B, :L].set(
        labels.astype(jnp.float32))

    kernel = functools.partial(
        _classifier_head_kernel,
        n_rows=B, n_cols=L, inv_count=1.0 / float(B * L))

    logits_p, loss = pl.pallas_call(
        kernel,
        out_shape=(
            jax.ShapeDtypeStruct((Bp, Lp), jnp.float32),   # padded logits
            jax.ShapeDtypeStruct((1, 1), jnp.float32),     # scalar loss
        ),
        grid=(nb,),
        in_specs=[
            pl.BlockSpec((TB, H), lambda i: (i, 0)),       # pooled tile
            pl.BlockSpec((H, Lp), lambda i: (0, 0)),       # weight (resident)
            pl.BlockSpec((1, Lp), lambda i: (0, 0)),       # bias (resident)
            pl.BlockSpec((TB, Lp), lambda i: (i, 0)),      # labels tile
        ],
        out_specs=(
            pl.BlockSpec((TB, Lp), lambda i: (i, 0)),      # lane-dense logits
            pl.BlockSpec(memory_space=pltpu.MemorySpace.SMEM),  # scalar loss
        ),
        compiler_params=pltpu.CompilerParams(
            # The loss accumulates across batch tiles into one SMEM scalar, so
            # the batch grid axis is a reduction -> must be "arbitrary".
            dimension_semantics=("arbitrary",),
        ),
    )(pooled_p, w_p, b_p, labels_p)

    return {"loss": loss[0, 0], "logits": logits_p[:B, :L]}


def _reference(last_hidden_state, weight, bias, labels):
    pooled = last_hidden_state[:, 0, :]
    logits = pooled @ weight.T + bias
    z, y = logits, labels
    loss = jnp.mean(jnp.maximum(z, 0.0) - z * y + jnp.log1p(jnp.exp(-jnp.abs(z))))
    return loss, logits


if __name__ == "__main__":
    # Small shapes consistent with the module: B=2, seq=8, hidden=32, labels=4.
    B, S, H, L = 2, 8, 32, 4

    key = jax.random.PRNGKey(0)
    k_hid, k_w, k_b, k_lab = jax.random.split(key, 4)

    last_hidden_state = jax.random.normal(k_hid, (B, S, H), dtype=jnp.float32)
    weight = jax.random.normal(k_w, (L, H), dtype=jnp.float32) * 0.05
    bias = jax.random.normal(k_b, (L,), dtype=jnp.float32) * 0.01
    labels = jax.random.bernoulli(k_lab, 0.5, (B, L)).astype(jnp.float32)

    out = instructblip_classifier_forward(last_hidden_state, weight, bias, labels)
    jax.block_until_ready(out)

    ref_loss, ref_logits = _reference(last_hidden_state, weight, bias, labels)
    assert jnp.allclose(out["logits"], ref_logits, atol=1e-5, rtol=1e-5)
    assert jnp.allclose(out["loss"], ref_loss, atol=1e-5, rtol=1e-5)

    print("KERNEL_OK")
</pallas_src>

<mosaic_0001>
module attributes {stable_mosaic.version = 11 : i64} {
  func.func @_classifier_head_kernel(%arg0: i32, %arg1: memref<8x32xf32, #tpu.memory_space<vmem>>, %arg2: memref<32x128xf32, #tpu.memory_space<vmem>>, %arg3: memref<1x128xf32, #tpu.memory_space<vmem>>, %arg4: memref<8x128xf32, #tpu.memory_space<vmem>>, %arg5: memref<8x128xf32, #tpu.memory_space<vmem>>, %arg6: memref<1x1xf32, #tpu.memory_space<smem>>) attributes {dimension_semantics = [#tpu.dimension_semantics<arbitrary>], iteration_bounds = array<i64: 1>, scalar_prefetch = 0 : i64, scratch_operands = 0 : i64, tpu.core_type = #tpu.core_type<tc>, window_params = [{transform_indices = @transform_0, window_bounds = array<i64: 8, 32>}, {pipeline_mode = #tpu.pipeline_mode<synchronous>, transform_indices = @transform_1, window_bounds = array<i64: 32, 128>}, {pipeline_mode = #tpu.pipeline_mode<synchronous>, transform_indices = @transform_2, window_bounds = array<i64: 1, 128>}, {transform_indices = @transform_3, window_bounds = array<i64: 8, 128>}, {transform_indices = @transform_4, window_bounds = array<i64: 8, 128>}, {transform_indices = @transform_5, window_bounds = array<i64: 1, 1>}]} {
    %c0_i32 = arith.constant 0 : i32
    %0 = arith.cmpi eq, %arg0, %c0_i32 : i32
    %1 = arith.extui %0 : i1 to i32
    %c0_i32_0 = arith.constant 0 : i32
    %2 = arith.cmpi ne, %1, %c0_i32_0 : i32
    scf.if %2 {
      %cst_20 = arith.constant 0.000000e+00 : f32
      %c0_21 = arith.constant 0 : index
      %c0_22 = arith.constant 0 : index
      %43 = memref.load %arg6[%c0_21, %c0_22] : memref<1x1xf32, #tpu.memory_space<smem>>
      memref.store %cst_20, %arg6[%c0_21, %c0_22] : memref<1x1xf32, #tpu.memory_space<smem>>
    } else {
    }
    %c0 = arith.constant 0 : index
    %c0_1 = arith.constant 0 : index
    %3 = vector.load %arg1[%c0, %c0_1] : memref<8x32xf32, #tpu.memory_space<vmem>>, vector<8x32xf32>
    %c0_2 = arith.constant 0 : index
    %c0_3 = arith.constant 0 : index
    %4 = vector.load %arg2[%c0_2, %c0_3] : memref<32x128xf32, #tpu.memory_space<vmem>>, vector<32x128xf32>
    %cst = arith.constant dense<0.000000e+00> : vector<8x128xf32>
    %5 = tpu.matmul %3, %4, %cst {dimension_numbers = #tpu.dot_dimension_numbers<[1], [0], [0], [1], [0, 0, 1, 1], [], []>} : vector<8x32xf32>, vector<32x128xf32>, vector<8x128xf32> -> vector<8x128xf32>
    %c0_4 = arith.constant 0 : index
    %c0_5 = arith.constant 0 : index
    %6 = vector.load %arg3[%c0_4, %c0_5] : memref<1x128xf32, #tpu.memory_space<vmem>>, vector<1x128xf32>
    %7 = vector.broadcast %6 : vector<1x128xf32> to vector<8x128xf32>
    %8 = arith.addf %5, %7 : vector<8x128xf32>
    %c0_6 = arith.constant 0 : index
    %c0_7 = arith.constant 0 : index
    %9 = vector.load %arg5[%c0_6, %c0_7] : memref<8x128xf32, #tpu.memory_space<vmem>>, vector<8x128xf32>
    tpu.vector_store %arg5[%c0_6, %c0_7], %8 {strides = array<i32>} : memref<8x128xf32, #tpu.memory_space<vmem>>, vector<8x128xf32>,
    %c0_8 = arith.constant 0 : index
    %c0_9 = arith.constant 0 : index
    %10 = vector.load %arg4[%c0_8, %c0_9] : memref<8x128xf32, #tpu.memory_space<vmem>>, vector<8x128xf32>
    %cst_10 = arith.constant 0.000000e+00 : f32
    %11 = vector.broadcast %cst_10 : f32 to vector<8x128xf32>
    %12 = arith.maximumf %8, %11 : vector<8x128xf32>
    %13 = arith.mulf %8, %10 : vector<8x128xf32>
    %14 = arith.subf %12, %13 : vector<8x128xf32>
    %15 = math.absf %8 : vector<8x128xf32>
    %cst_11 = arith.constant 0.000000e+00 : f32
    %16 = vector.broadcast %cst_11 : f32 to vector<8x128xf32>
    %17 = arith.subf %16, %15 : vector<8x128xf32>
    %18 = math.exp %17 : vector<8x128xf32>
    %19 = math.log1p %18 : vector<8x128xf32>
    %20 = arith.addf %14, %19 : vector<8x128xf32>
    %c8_i32 = arith.constant 8 : i32
    %21 = arith.muli %arg0, %c8_i32 : i32
    %22 = tpu.iota {dimensions = array<i32: 0>} : vector<8x128xi32>
    %23 = vector.broadcast %21 : i32 to vector<8x128xi32>
    %24 = arith.addi %23, %22 : vector<8x128xi32>
    %25 = tpu.iota {dimensions = array<i32: 1>} : vector<8x128xi32>
    %c2_i32 = arith.constant 2 : i32
    %26 = vector.broadcast %c2_i32 : i32 to vector<8x128xi32>
    %27 = arith.cmpi slt, %24, %26 : vector<8x128xi32>
    %c4_i32 = arith.constant 4 : i32
    %28 = vector.broadcast %c4_i32 : i32 to vector<8x128xi32>
    %29 = arith.cmpi slt, %25, %28 : vector<8x128xi32>
    %30 = arith.andi %27, %29 : vector<8x128xi1>
    %c0_12 = arith.constant 0 : index
    %c0_13 = arith.constant 0 : index
    %31 = memref.load %arg6[%c0_12, %c0_13] : memref<1x1xf32, #tpu.memory_space<smem>>
    %cst_14 = arith.constant 0.000000e+00 : f32
    %32 = vector.broadcast %cst_14 : f32 to vector<8x128xf32>
    %33 = arith.select %30, %20, %32 : vector<8x128xi1>, vector<8x128xf32>
    %34 = vector.shape_cast %33 : vector<8x128xf32> to vector<1x8x128xf32>
    %cst_15 = arith.constant dense<0.000000e+00> : vector<1xf32>
    %35 = vector.multi_reduction <add>, %34, %cst_15 [1, 2] : vector<1x8x128xf32> to vector<1xf32>
    %36 = vector.shape_cast %35 : vector<1xf32> to vector<1x1x1xf32>
    %37 = vector.extract %36[0, 0, 0] : f32 from vector<1x1x1xf32>
    %38 = arith.addf %31, %37 : f32
    %c0_16 = arith.constant 0 : index
    %c0_17 = arith.constant 0 : index
    %39 = memref.load %arg6[%c0_16, %c0_17] : memref<1x1xf32, #tpu.memory_space<smem>>
    memref.store %38, %arg6[%c0_16, %c0_17] : memref<1x1xf32, #tpu.memory_space<smem>>
    %c0_i32_18 = arith.constant 0 : i32
    %40 = arith.cmpi eq, %arg0, %c0_i32_18 : i32
    %41 = arith.extui %40 : i1 to i32
    %c0_i32_19 = arith.constant 0 : i32
    %42 = arith.cmpi ne, %41, %c0_i32_19 : i32
    scf.if %42 {
      %c0_20 = arith.constant 0 : index
      %c0_21 = arith.constant 0 : index
      %43 = memref.load %arg6[%c0_20, %c0_21] : memref<1x1xf32, #tpu.memory_space<smem>>
      %cst_22 = arith.constant 1.250000e-01 : f32
      %44 = arith.mulf %43, %cst_22 : f32
      %c0_23 = arith.constant 0 : index
      %c0_24 = arith.constant 0 : index
      %45 = memref.load %arg6[%c0_23, %c0_24] : memref<1x1xf32, #tpu.memory_space<smem>>
      memref.store %44, %arg6[%c0_23, %c0_24] : memref<1x1xf32, #tpu.memory_space<smem>>
    } else {
    }
    return
  }
  func.func @transform_0(%arg0: i32) -> (i32, i32) {
    %c0_i32 = arith.constant 0 : i32
    %c0_i32_0 = arith.constant 0 : i32
    return %arg0, %c0_i32 : i32, i32
  }
  func.func @transform_1(%arg0: i32) -> (i32, i32) {
    %c0_i32 = arith.constant 0 : i32
    %c0_i32_0 = arith.constant 0 : i32
    %c0_i32_1 = arith.constant 0 : i32
    return %c0_i32, %c0_i32_0 : i32, i32
  }
  func.func @transform_2(%arg0: i32) -> (i32, i32) {
    %c0_i32 = arith.constant 0 : i32
    %c0_i32_0 = arith.constant 0 : i32
    %c0_i32_1 = arith.constant 0 : i32
    return %c0_i32, %c0_i32_0 : i32, i32
  }
  func.func @transform_3(%arg0: i32) -> (i32, i32) {
    %c0_i32 = arith.constant 0 : i32
    %c0_i32_0 = arith.constant 0 : i32
    return %arg0, %c0_i32 : i32, i32
  }
  func.func @transform_4(%arg0: i32) -> (i32, i32) {
    %c0_i32 = arith.constant 0 : i32
    %c0_i32_0 = arith.constant 0 : i32
    return %arg0, %c0_i32 : i32, i32
  }
  func.func @transform_5(%arg0: i32) -> (i32, i32) {
    %c0_i32 = arith.constant 0 : i32
    %c0_i32_0 = arith.constant 0 : i32
    %c0_i32_1 = arith.constant 0 : i32
    return %c0_i32, %c0_i32_0 : i32, i32
  }
}

</mosaic_0001>

<bundles_post_ra>
// kernel: tpu_custom_call.1
= control target key start
LH: loop header
LB: loop body
LE: loop exit
PB: predicated region body
PF: predicated region fallthrough
CT: control target
= control target key end

     0   :  { %11 = vsyncpa [#allocation3], 0  ;;  %s415_s0 = inlined_call_operand.hbm [shape: f32[8,32], index: 0, kind: input, shape index: {}]   ;;  %s416_s1 = inlined_call_operand.hbm [shape: f32[32,128], index: 1, kind: input, shape index: {}]   ;;  %s417_s2 = inlined_call_operand.vmem [shape: f32[1,128], index: 2, kind: input, shape index: {}]   ;;  %s418_s3 = inlined_call_operand.hbm [shape: f32[8,128], index: 3, kind: input, shape index: {}]   ;;  %s419_s4 = inlined_call_operand.hbm [shape: f32[8,128], index: 4, kind: output, shape index: {0}]   ;;  %s420_s5 = inlined_call_operand.hbm [shape: f32[1,1], index: 5, kind: output, shape index: {1}]  }
   0x1   :  { %12 = vsyncpa [#allocation7], 0 }
   0x2   :  { %13 = vsyncpa [#allocation4], 0 }
   0x3   :  { %14 = vsyncpa [#allocation5], 0  ;;  %s358_s18 = smov [#allocation6]  }
   0x4   :  { %s30_s19 = sshll.u32 %s358_s18, 4  ;;  %s31_s19 = int_to_ptr.vmem [resolvable:$true] %s30_s19 }
   0x5   :  { %s270_s20 = scalar_lea.vmem %s31_s19, 512  ;;  %p275_p1 = scmp.lt.s32.totalorder %s31_s19, %s31_s19 }
   0x6   :  { %p271_p0 = scmp.ne.s32.totalorder %s31_s19, %s270_s20  ;;  %p276_p2 = scmp.lt.s32.totalorder %s270_s20, %s270_s20 }
   0x8   :  { %p277_p3 = por %p276_p2, %p275_p1 }
   0xa   :  { %p278_p4 = pnand %p277_p3, %p271_p0 }
   0xc   :  { %281 = shalt.err (!%p278_p4)
}
   0xd   :  { %s359_s21 = smov 128   ;;  %s360_s22 = smov 8  }
   0xe   :  { %36 = dma.hbm_to_vmem [thread:$0]  %s416_s1, 512, %s31_s19, [#allocation7], %s359_s21, %s359_s21, %s360_s22  }
   0xf   :  { %s361_s25 = smov [#allocation2]   ;;  %s362_s27 = smov [#allocation8]  }
  0x10   :  { %s21_s26 = sshll.u32 %s361_s25, 4  ;;  %s45_s28 = sshll.u32 %s362_s27, 4  ;;  %s22_s26 = int_to_ptr.vmem [resolvable:$true] %s21_s26  ;;  %s46_s28 = int_to_ptr.vmem [resolvable:$true] %s45_s28 }
  0x11   :  { %s290_s29 = scalar_lea.vmem %s22_s26, 128  ;;  %p295_p6 = scmp.lt.s32.totalorder %s22_s26, %s22_s26 }
  0x12   :  { %p291_p5 = scmp.ne.s32.totalorder %s22_s26, %s290_s29  ;;  %p296_p7 = scmp.lt.s32.totalorder %s290_s29, %s290_s29 }
  0x14   :  { %p297_p8 = por %p296_p7, %p295_p6 }
  0x16   :  { %p298_p9 = pnand %p297_p8, %p291_p5 }
  0x18   :  { %301 = shalt.err (!%p298_p9)
}
  0x19   :  { %24 = dma.hbm_to_vmem [thread:$0]  %s415_s0, 128, %s22_s26, [#allocation3]  }
  0x1a   :  { %s310_s7 = scalar_lea.vmem %s46_s28, 128  ;;  %p315_p11 = scmp.lt.s32.totalorder %s46_s28, %s46_s28 }
  0x1b   :  { %p311_p10 = scmp.ne.s32.totalorder %s46_s28, %s310_s7  ;;  %p316_p12 = scmp.lt.s32.totalorder %s310_s7, %s310_s7 }
  0x1d   :  { %p317_p13 = por %p316_p12, %p315_p11 }
  0x1f   :  { %p318_p0 = pnand %p317_p13, %p311_p10 }
  0x21   :  { %321 = shalt.err (!%p318_p0)
}
  0x22   :  { %48 = dma.hbm_to_vmem [thread:$0]  %s418_s3, 128, %s46_s28, [#allocation7]  }
  0x23   :  { %350 = dma.done.wait [#allocation3], 128  }
  0x24   :  { %351 = vsyncadd [#allocation3], 4294967168 }
  0x25   :  { %352 = dma.done.wait [#allocation7], 640  }
  0x26   :  { %353 = vsyncadd [#allocation7], 4294966656  ;;  %v363_v0 = vmov 0.0   ;;  %vm364_vm0 = vmmov 0   ;;  %v68_v1 = vld [vmem:[#allocation6 + $0x18] sm:$0xff]  ;;  %v67_v2 = vld [vmem:[#allocation6 + $0x10] sm:$0xff]  ;;  %v170_v15 = vlaneseq }
  0x27   :  { %235 = vmatprep.subr.mxu0 %v363_v0  ;;  %243 = vmatprep.mubr.msk.f32.mxu0 %vm364_vm0, %v363_v0  ;;  %v66_v3 = vld [vmem:[#allocation6 + $0x8] sm:$0xff]  ;;  %v65_v4 = vld [vmem:[#allocation6] sm:$0xff]  ;;  %v64_v5 = vld [vmem:[#allocation2] sm:$0xff]  ;;  %vm76_vm1 = vcmask 261120  }
  0x28   :  { %236 = vmatpush3.msra.mxu0 %v68_v1  ;;  %v228_v6 = vld [vmem:[%s417_s2] ss:$0 sm:$0xff]  ;;  %v151_v17 = vld [vmem:[#allocation8] sm:$0xff]  ;;  %v171_v18 = vshrl.u32 %v170_v15, 7  ;;  %v175_v19 = vand.u32 127, %v170_v15  ;;  %s365_s2 = smov [#allocation9]  }
  0x29   :  { %237 = vmatprep.subr.mxu0 %v363_v0  ;;  %s205_s9 = sshll.u32 %s365_s2, 4  ;;  %s206_s9 = int_to_ptr.vmem [resolvable:$true] %s205_s9 }
  0x2a   :  { %238 = vmatpush3.msra.mxu0 %v67_v2  ;;  %vm176_vm2 = vcmp.lt.s32.totalorder %v171_v18, 2  ;;  %vm177_vm3 = vcmp.lt.s32.totalorder %v175_v19, 4  ;;  %s322_s10 = scalar_lea.vmem %s206_s9, 128  ;;  %p327_p2 = scmp.lt.s32.totalorder %s206_s9, %s206_s9 }
  0x2b   :  { %239 = vmatprep.subr.mxu0 %v363_v0  ;;  %vm178_vm5 = vmand %vm176_vm2, %vm177_vm3  ;;  %p323_p1 = scmp.ne.s32.totalorder %s206_s9, %s322_s10  ;;  %p328_p3 = scmp.lt.s32.totalorder %s322_s10, %s322_s10 }
  0x2c   :  { %240 = vmatpush3.msra.mxu0 %v66_v3 }
  0x2d   :  { %241 = vmatprep.subr.mxu0 %v363_v0  ;;  %p329_p4 = por %p328_p3, %p327_p2 }
  0x2e   :  { %242 = vmatpush3.msra.mxu0 %v65_v4 }
  0x2f   :  { %244 = vmatmul.mubr.msk.f32.vlgmr.msra.gmra.mxu0 %vm76_vm1, %v64_v5  ;;  %p330_p5 = pnand %p329_p4, %p323_p1 }
  0xef   :  { %v146_v7 = vpop.f32.mrf.mxu0 }
  0xf0   :  { %v147_v8 = vadd.f32 %v228_v6, %v146_v7 }
  0xf1   :  { %v245_v9 = vpop.f32.mrf.mxu0 }
  0xf2   :  { %v155_v10 = vand.u32 2147483647, %v147_v8  ;;  %150 = vst [vmem:[#allocation9] sm:$0xff] %v147_v8  ;;  %v152_v21 = vmax.f32 %v147_v8, 0.0  ;;  %v153_v22 = vmul.f32 %v151_v17, %v147_v8 }
  0xf4   :  { %v156_v11 = vsub.f32 0.0, %v155_v10  ;;  %v154_v27 = vsub.f32 %v152_v21, %v153_v22 }
  0xf6   :  { %v157_v12 = vmul.f32 1.442695, %v156_v11 }
  0xf8   :  { %258 = vpow2.f32 %v157_v12 }
 0x105   :  { %v259_v13 = vpop.eup %258 }
 0x106   :  { %v159_v14 = vadd.f32 1.0, %v259_v13  ;;  %v162_v16 = vmul.f32 -0.5, %v259_v13  ;;  %v165_v23 = vand.u32 2147483647, %v259_v13 }
 0x108   :  { %260 = vlog2.f32 %v159_v14  ;;  %v163_v20 = vadd.f32 1.0, %v162_v16  ;;  %vm166_vm4 = vcmp.lt.f32.partialorder %v165_v23, 0.0004427343 }
 0x10a   :  { %v164_v26 = vmul.f32 %v259_v13, %v163_v20 }
 0x115   :  { %v261_v24 = vpop.eup %260 }
 0x116   :  { %v161_v25 = vmul.f32 0.6931472, %v261_v24 }
 0x118   :  { %v167_v28 = vsel %vm166_vm4, %v164_v26, %v161_v25 }
 0x119   :  { %v168_v29 = vadd.f32 %v167_v28, %v154_v27 }
 0x11b   :  { %v180_v30 = vsel %vm178_vm5, %v168_v29, 0.0 }
 0x11c   :  { %181 = vadd.xlane.f32.xlu0 %v180_v30 }
 0x11d   :  { %333 = shalt.err (!%p330_p5)
}
 0x11e   :  { %208 = dma.vmem_to_hbm [thread:$0]  %s206_s9, 128, %s419_s4, [#allocation4]  }
 0x11f   :  { %s366_s15 = smov [#allocation10]  }
 0x1a5   :  { %v182_v31 = vpop.xlane.xlu0 %181 }
 0x1a6   :  { %v183_v32 = vrot.slane %v182_v31, 4 }
 0x1a8   :  { %v184_v33 = vadd.f32 %v183_v32, %v182_v31 }
 0x1aa   :  { %v185_v34 = vrot.slane %v184_v33, 2 }
 0x1ac   :  { %v186_v35 = vadd.f32 %v185_v34, %v184_v33 }
 0x1ae   :  { %v187_v36 = vrot.slane %v186_v35, 1 }
 0x1b0   :  { %v188_v37 = vadd.f32 %v187_v36, %v186_v35 }
 0x1b2   :  { %246 = vpush %v188_v37 }
 0x1e3   :  { %s247_s13 = spop %246 }
 0x1e4   :  { %s197_s14 = smul.f32 0.125, %s247_s13 }
 0x1e6   :  { %198 = sst [smem:[#allocation10]] %s197_s14 }
 0x1e7   :  { %216 = dma.smem_to_hbm %s366_s15, 16, %s420_s5, [#allocation5]  }
 0x1e8   :  { %354 = dma.done.wait [#allocation4], 128  }
 0x1e9   :  { %355 = vsyncadd [#allocation4], 4294967168 }
 0x1ea   :  { %356 = dma.done.wait [#allocation5], 16  }
 0x1eb   :  { %357 = vsyncadd [#allocation5], 4294967280 }
 0x1ec   :  { %223 = sfence }
 0x1ed   :  { %224 = vsyncpa [#allocation3], 1 }
 0x1ee   :  { %225 = vsyncpa [#allocation7], 1 }
 0x1ef   :  { %226 = vsyncpa [#allocation4], 1 }
 0x1f0   :  { %227 = vsyncpa [#allocation5], 1 }

</bundles_post_ra>
